<compile_context>
chip_gen: v7x
topology: tpu7x:2x2x1
jax: 0.10.0
libtpu: 0.0.40
codegen_flags: <defaults>
</compile_context>

<pallas_src>
import functools
import math

import jax
import jax.numpy as jnp
from jax.experimental import pallas as pl
from jax.experimental.pallas import tpu as pltpu


_VMEM_LIMIT = 48 * 1024 * 1024  # fits v5e/v6e (128 MiB) and v7x (64 MiB) parts


def _tile(dim, target, align):
    """Largest multiple-of-`align` divisor of `dim` that is <= target, else the
    full dim (full-dim blocks are always legal w.r.t. the (8,128) rule)."""
    if dim <= target:
        return dim
    t = (target // align) * align
    while t >= align:
        if dim % t == 0:
            return t
        t -= align
    return dim


# ---------------------------------------------------------------------------
# Kernel 1: tiled dense linear layer  out = x @ W + b
#   x: (M, K), W: (K, N), b: (1, N) -> out: (M, N)
# ---------------------------------------------------------------------------
def _linear_kernel(x_ref, w_ref, b_ref, o_ref, acc_ref):
    k = pl.program_id(2)

    @pl.when(k == 0)
    def _():
        acc_ref[...] = jnp.zeros(acc_ref.shape, acc_ref.dtype)

    acc_ref[...] += jnp.dot(x_ref[...], w_ref[...],
                            preferred_element_type=jnp.float32)

    @pl.when(k == pl.num_programs(2) - 1)
    def _():
        o_ref[...] = (acc_ref[...] + b_ref[...].astype(jnp.float32)
                      ).astype(o_ref.dtype)


def linear(x, w, b, *, tm_target=512, tn_target=512, tk_target=1024):
    m, cin = x.shape
    cout = w.shape[1]
    tm = _tile(m, tm_target, 8)
    tn = _tile(cout, tn_target, 128)
    tk = _tile(cin, tk_target, 128)
    assert m % tm == 0 and cout % tn == 0 and cin % tk == 0
    b2 = b.reshape(1, cout)
    return pl.pallas_call(
        _linear_kernel,
        out_shape=jax.ShapeDtypeStruct((m, cout), x.dtype),
        grid=(m // tm, cout // tn, cin // tk),
        in_specs=[
            pl.BlockSpec((tm, tk), lambda i, j, k: (i, k)),
            pl.BlockSpec((tk, tn), lambda i, j, k: (k, j)),
            pl.BlockSpec((1, tn), lambda i, j, k: (0, j)),
        ],
        out_specs=pl.BlockSpec((tm, tn), lambda i, j, k: (i, j)),
        scratch_shapes=[pltpu.VMEM((tm, tn), jnp.float32)],
        compiler_params=pltpu.CompilerParams(
            dimension_semantics=("parallel", "parallel", "arbitrary"),
            vmem_limit_bytes=_VMEM_LIMIT),
    )(x, w, b2)


# ---------------------------------------------------------------------------
# Kernel 2: flash-style causal attention over the fused qkv tensor.
#   qkv: (B, T, 3C) -> y: (B, T, C)
# Grid: (batch, lower-triangular (q-tile, kv-tile) pair).  The pair index
# tables are scalar-prefetched into SMEM, so above-diagonal tiles are never
# DMA'd and never cost a grid step.  The kv axis of each q group is the
# online-softmax reduction (scratch accumulators persist across pairs).
# ---------------------------------------------------------------------------
def _attn_kernel(qi_tbl_ref, ki_tbl_ref, q_ref, k_ref, v_ref, o_ref,
                 m_sc, l_sc, acc_sc, *, nhead, head_dim):
    s_idx = pl.program_id(1)
    qi = qi_tbl_ref[s_idx]
    ki = ki_tbl_ref[s_idx]

    # First kv tile of this q group -> reset running stats / accumulator.
    @pl.when(ki == 0)
    def _():
        m_sc[...] = jnp.full(m_sc.shape, -jnp.inf, m_sc.dtype)
        l_sc[...] = jnp.zeros(l_sc.shape, l_sc.dtype)
        acc_sc[...] = jnp.zeros(acc_sc.shape, acc_sc.dtype)

    q_blk = q_ref[0]    # (tq,  C) : q columns only (scale already folded in)
    k_blk = k_ref[0]    # (tkv, C)
    v_blk = v_ref[0]    # (tkv, C)
    tq = q_blk.shape[0]
    tkv = k_blk.shape[0]

    def update(masked):
        if masked:
            # Diagonal-aligned square tile -> local indices suffice; computed
            # once per tile and shared across all heads.
            row = jax.lax.broadcasted_iota(jnp.int32, (tq, tkv), 0)
            col = jax.lax.broadcasted_iota(jnp.int32, (tq, tkv), 1)
            causal = col <= row
        # Static Python loop over heads (nhead is small & static).  At 128x128
        # the f32 score tile is 16 vregs, so per-head temporaries stay resident.
        # NOTE: head_dim < 128 (toy config) under-fills lanes; real models with
        # head_dim = 128 make every per-head tile lane-dense.
        for h in range(nhead):
            lo = h * head_dim
            q_h = q_blk[:, lo:lo + head_dim]
            k_h = k_blk[:, lo:lo + head_dim]
            v_h = v_blk[:, lo:lo + head_dim]

            s = jax.lax.dot_general(
                q_h, k_h, (((1,), (1,)), ((), ())),
                preferred_element_type=jnp.float32)            # (tq, tkv) f32
            if masked:
                s = jnp.where(causal, s, jnp.float32(-1e30))

            m_prev = m_sc[h]                                   # (tq, 1) f32
            m_new = jnp.maximum(m_prev, jnp.max(s, axis=-1, keepdims=True))
            alpha = jnp.exp(m_prev - m_new)
            p = jnp.exp(s - m_new)
            if masked:
                p = jnp.where(causal, p, 0.0)   # guard fully-masked rows
            l_sc[h] = alpha * l_sc[h] + jnp.sum(p, axis=-1, keepdims=True)
            acc_sc[h] = alpha * acc_sc[h] + jnp.dot(
                p.astype(v_h.dtype), v_h, preferred_element_type=jnp.float32)
            m_sc[h] = m_new

    # Interior tile: strictly below the diagonal -> no mask work at all.
    @pl.when(ki < qi)
    def _():
        update(False)

    # Diagonal tile: masked update, and it is the last kv step of the group ->
    # finalize with a single full-width lane-dense store in (T, C) layout.
    @pl.when(ki == qi)
    def _():
        update(True)
        heads = []
        for h in range(nhead):
            heads.append((acc_sc[h] / l_sc[h]).astype(o_ref.dtype))
        o_ref[0] = jnp.concatenate(heads, axis=-1)


def causal_attention(qkv, *, nhead, n_embd, tq_target=128):
    bsz, t, three_c = qkv.shape
    assert three_c == 3 * n_embd
    # Column-split BlockSpecs need a lane-aligned n_embd.
    # TODO(synk): fall back to full 3C-wide blocks when n_embd % 128 != 0.
    assert n_embd % 128 == 0, "column-split qkv BlockSpecs need n_embd % 128 == 0"
    head_dim = n_embd // nhead

    tq = _tile(t, tq_target, 8)
    tkv = tq  # diagonal-aligned square tiles: every visited row has >=1 valid key
    nq = t // tq

    # Lower-triangular (q-tile, kv-tile) enumeration; ki runs 0..qi inside each
    # q group so ki == 0 is the init step and ki == qi the finalize step.
    qi_list, ki_list = [], []
    for q_i in range(nq):
        for k_i in range(q_i + 1):
            qi_list.append(q_i)
            ki_list.append(k_i)
    qi_tbl = jnp.asarray(qi_list, dtype=jnp.int32)
    ki_tbl = jnp.asarray(ki_list, dtype=jnp.int32)
    npairs = len(qi_list)

    kernel = functools.partial(_attn_kernel, nhead=nhead, head_dim=head_dim)
    return pl.pallas_call(
        kernel,
        out_shape=jax.ShapeDtypeStruct((bsz, t, n_embd), qkv.dtype),
        grid_spec=pltpu.PrefetchScalarGridSpec(
            num_scalar_prefetch=2,
            grid=(bsz, npairs),
            in_specs=[
                # q columns [0, C), k columns [C, 2C), v columns [2C, 3C):
                # each tile DMAs only the C-wide slab it actually uses.
                pl.BlockSpec((1, tq, n_embd),
                             lambda b, s, qi_t, ki_t: (b, qi_t[s], 0)),
                pl.BlockSpec((1, tkv, n_embd),
                             lambda b, s, qi_t, ki_t: (b, ki_t[s], 1)),
                pl.BlockSpec((1, tkv, n_embd),
                             lambda b, s, qi_t, ki_t: (b, ki_t[s], 2)),
            ],
            out_specs=pl.BlockSpec((1, tq, n_embd),
                                   lambda b, s, qi_t, ki_t: (b, qi_t[s], 0)),
            scratch_shapes=[
                pltpu.VMEM((nhead, tq, 1), jnp.float32),         # running max m
                pltpu.VMEM((nhead, tq, 1), jnp.float32),         # running denom l
                pltpu.VMEM((nhead, tq, head_dim), jnp.float32),  # running acc
            ],
        ),
        compiler_params=pltpu.CompilerParams(
            dimension_semantics=("parallel", "arbitrary"),
            vmem_limit_bytes=_VMEM_LIMIT),
    )(qi_tbl, ki_tbl, qkv, qkv, qkv)


# ---------------------------------------------------------------------------
# One-time parameter prep: fold 1/sqrt(head_dim) into the q columns of the
# fused qkv projection so the attention kernel never scales in the hot loop.
# ---------------------------------------------------------------------------
def fold_attention_scale(params, nhead):
    c = params["w_proj"].shape[0]
    head_dim = c // nhead
    scale = 1.0 / math.sqrt(head_dim)
    w_attn = params["w_attn"].at[:, :c].multiply(scale)
    b_attn = params["b_attn"].at[:c].multiply(scale)
    out = dict(params)
    out["w_attn"] = w_attn
    out["b_attn"] = b_attn
    return out


# ---------------------------------------------------------------------------
# Full SelfAttention forward (eval mode: dropout is identity).
# Expects params already passed through fold_attention_scale().
# ---------------------------------------------------------------------------
def self_attention(x, params, nhead, *, attn_tq_target=128):
    bsz, t, c = x.shape

    # Fused qkv projection (tiled Pallas matmul). Result stays in (B, T, 3C):
    # no q/k/v split or (B,H,T,hd) transpose is materialized in HBM.
    qkv = linear(x.reshape(bsz * t, c), params["w_attn"], params["b_attn"])
    qkv = qkv.reshape(bsz, t, 3 * c)

    # Flash-style causal attention; output already in (B, T, C) layout.
    y = causal_attention(qkv, nhead=nhead, n_embd=c, tq_target=attn_tq_target)

    # Output projection (tiled Pallas matmul).
    y = linear(y.reshape(bsz * t, c), params["w_proj"], params["b_proj"])
    return y.reshape(bsz, t, c)


# ---------------------------------------------------------------------------
# Pure-JAX reference for correctness checking (uses the *unscaled* params).
# ---------------------------------------------------------------------------
def self_attention_ref(x, params, nhead):
    bsz, t, c = x.shape
    hd = c // nhead
    qkv = x @ params["w_attn"] + params["b_attn"]
    q, k, v = jnp.split(qkv, 3, axis=2)
    q = q.reshape(bsz, t, nhead, hd).transpose(0, 2, 1, 3)
    k = k.reshape(bsz, t, nhead, hd).transpose(0, 2, 1, 3)
    v = v.reshape(bsz, t, nhead, hd).transpose(0, 2, 1, 3)
    s = jnp.einsum("bhqd,bhkd->bhqk", q, k) / math.sqrt(hd)
    mask = jnp.tril(jnp.ones((t, t), dtype=bool))
    s = jnp.where(mask, s, -1e30)
    att = jax.nn.softmax(s, axis=-1)
    y = jnp.einsum("bhqk,bhkd->bhqd", att, v)
    y = y.transpose(0, 2, 1, 3).reshape(bsz, t, c)
    return y @ params["w_proj"] + params["b_proj"]


if __name__ == "__main__":
    # config: n_embd=128 (lane-aligned), nhead=4, bias=True, dropout=0.0 (eval).
    B, T, C, NHEAD = 2, 16, 128, 4

    key = jax.random.PRNGKey(0)
    kx, k1, k2, k3, k4 = jax.random.split(key, 5)

    x = jax.random.normal(kx, (B, T, C), dtype=jnp.float32)

    # Parameters stored as (in, out) so kernels compute x @ W + b
    # (equivalent to torch's x @ weight.T + bias).
    params = {
        "w_attn": 0.02 * jax.random.normal(k1, (C, 3 * C), dtype=jnp.float32),
        "b_attn": 0.02 * jax.random.normal(k2, (3 * C,), dtype=jnp.float32),
        "w_proj": 0.02 * jax.random.normal(k3, (C, C), dtype=jnp.float32),
        "b_proj": 0.02 * jax.random.normal(k4, (C,), dtype=jnp.float32),
    }
    prepared = fold_attention_scale(params, NHEAD)

    # Small q tile (8) so the test exercises multiple q groups, the interior
    # (unmasked) path, the diagonal (masked) path, and the pair index tables.
    out = self_attention(x, prepared, NHEAD, attn_tq_target=8)
    out = jax.block_until_ready(out)

    ref = self_attention_ref(x, params, NHEAD)
    assert out.shape == (B, T, C)
    assert jnp.allclose(out, ref, atol=1e-3, rtol=1e-3), "mismatch vs reference"

    # TODO(synk): attn_dropout / resid_dropout are identity in eval mode;
    # training-mode dropout is not implemented.
    print("KERNEL_OK")
</pallas_src>

<mosaic_0001>
module attributes {stable_mosaic.version = 11 : i64} {
  func.func @_linear_kernel(%arg0: i32, %arg1: i32, %arg2: i32, %arg3: memref<32x128xf32, #tpu.memory_space<vmem>>, %arg4: memref<128x384xf32, #tpu.memory_space<vmem>>, %arg5: memref<1x384xf32, #tpu.memory_space<vmem>>, %arg6: memref<32x384xf32, #tpu.memory_space<vmem>>, %arg7: memref<32x384xf32, #tpu.memory_space<vmem>>) attributes {dimension_semantics = [#tpu.dimension_semantics<parallel>, #tpu.dimension_semantics<parallel>, #tpu.dimension_semantics<arbitrary>], iteration_bounds = array<i64: 1, 1, 1>, scalar_prefetch = 0 : i64, scratch_operands = 1 : i64, tpu.core_type = #tpu.core_type<tc>, window_params = [{transform_indices = @transform_0, window_bounds = array<i64: 32, 128>}, {transform_indices = @transform_1, window_bounds = array<i64: 128, 384>}, {transform_indices = @transform_2, window_bounds = array<i64: 1, 384>}, {transform_indices = @transform_3, window_bounds = array<i64: 32, 384>}]} {
    %c0_i32 = arith.constant 0 : i32
    %0 = arith.cmpi eq, %arg2, %c0_i32 : i32
    %1 = arith.extui %0 : i1 to i32
    %c0_i32_0 = arith.constant 0 : i32
    %2 = arith.cmpi ne, %1, %c0_i32_0 : i32
    scf.if %2 {
      %cst_10 = arith.constant 0.000000e+00 : f32
      %12 = vector.broadcast %cst_10 : f32 to vector<32x384xf32>
      %c0_11 = arith.constant 0 : index
      %c0_12 = arith.constant 0 : index
      %13 = vector.load %arg7[%c0_11, %c0_12] : memref<32x384xf32, #tpu.memory_space<vmem>>, vector<32x384xf32>
      tpu.vector_store %arg7[%c0_11, %c0_12], %12 {strides = array<i32>} : memref<32x384xf32, #tpu.memory_space<vmem>>, vector<32x384xf32>,
    } else {
    }
    %c0 = arith.constant 0 : index
    %c0_1 = arith.constant 0 : index
    %3 = vector.load %arg7[%c0, %c0_1] : memref<32x384xf32, #tpu.memory_space<vmem>>, vector<32x384xf32>
    %c0_2 = arith.constant 0 : index
    %c0_3 = arith.constant 0 : index
    %4 = vector.load %arg3[%c0_2, %c0_3] : memref<32x128xf32, #tpu.memory_space<vmem>>, vector<32x128xf32>
    %c0_4 = arith.constant 0 : index
    %c0_5 = arith.constant 0 : index
    %5 = vector.load %arg4[%c0_4, %c0_5] : memref<128x384xf32, #tpu.memory_space<vmem>>, vector<128x384xf32>
    %cst = arith.constant dense<0.000000e+00> : vector<32x384xf32>
    %6 = tpu.matmul %4, %5, %cst {dimension_numbers = #tpu.dot_dimension_numbers<[1], [0], [0], [1], [0, 0, 1, 1], [], []>} : vector<32x128xf32>, vector<128x384xf32>, vector<32x384xf32> -> vector<32x384xf32>
    %7 = arith.addf %3, %6 : vector<32x384xf32>
    %c0_6 = arith.constant 0 : index
    %c0_7 = arith.constant 0 : index
    %8 = vector.load %arg7[%c0_6, %c0_7] : memref<32x384xf32, #tpu.memory_space<vmem>>, vector<32x384xf32>
    tpu.vector_store %arg7[%c0_6, %c0_7], %7 {strides = array<i32>} : memref<32x384xf32, #tpu.memory_space<vmem>>, vector<32x384xf32>,
    %c0_i32_8 = arith.constant 0 : i32
    %9 = arith.cmpi eq, %arg2, %c0_i32_8 : i32
    %10 = arith.extui %9 : i1 to i32
    %c0_i32_9 = arith.constant 0 : i32
    %11 = arith.cmpi ne, %10, %c0_i32_9 : i32
    scf.if %11 {
      %c0_10 = arith.constant 0 : index
      %c0_11 = arith.constant 0 : index
      %12 = vector.load %arg7[%c0_10, %c0_11] : memref<32x384xf32, #tpu.memory_space<vmem>>, vector<32x384xf32>
      %c0_12 = arith.constant 0 : index
      %c0_13 = arith.constant 0 : index
      %13 = vector.load %arg5[%c0_12, %c0_13] : memref<1x384xf32, #tpu.memory_space<vmem>>, vector<1x384xf32>
      %14 = vector.broadcast %13 : vector<1x384xf32> to vector<32x384xf32>
      %15 = arith.addf %12, %14 : vector<32x384xf32>
      %c0_14 = arith.constant 0 : index
      %c0_15 = arith.constant 0 : index
      %16 = vector.load %arg6[%c0_14, %c0_15] : memref<32x384xf32, #tpu.memory_space<vmem>>, vector<32x384xf32>
      tpu.vector_store %arg6[%c0_14, %c0_15], %15 {strides = array<i32>} : memref<32x384xf32, #tpu.memory_space<vmem>>, vector<32x384xf32>,
    } else {
    }
    return
  }
  func.func @transform_0(%arg0: i32, %arg1: i32, %arg2: i32) -> (i32, i32) {
    %c0_i32 = arith.constant 0 : i32
    return %arg0, %arg2 : i32, i32
  }
  func.func @transform_1(%arg0: i32, %arg1: i32, %arg2: i32) -> (i32, i32) {
    %c0_i32 = arith.constant 0 : i32
    return %arg2, %arg1 : i32, i32
  }
  func.func @transform_2(%arg0: i32, %arg1: i32, %arg2: i32) -> (i32, i32) {
    %c0_i32 = arith.constant 0 : i32
    %c0_i32_0 = arith.constant 0 : i32
    return %c0_i32, %arg1 : i32, i32
  }
  func.func @transform_3(%arg0: i32, %arg1: i32, %arg2: i32) -> (i32, i32) {
    %c0_i32 = arith.constant 0 : i32
    return %arg0, %arg1 : i32, i32
  }
}

</mosaic_0001>

<bundles_post_ra>
// kernel: tpu_custom_call.1
= control target key start
LH: loop header
LB: loop body
LE: loop exit
PB: predicated region body
PF: predicated region fallthrough
CT: control target
= control target key end

     0   :  { %8 = vsyncpa [#allocation4], 0  ;;  %s674_s0 = inlined_call_operand.hbm [shape: f32[32,128], index: 0, kind: input, shape index: {}]   ;;  %s675_s1 = inlined_call_operand.hbm [shape: f32[128,384], index: 1, kind: input, shape index: {}]   ;;  %s676_s2 = inlined_call_operand.vmem [shape: f32[1,384], index: 2, kind: input, shape index: {}]   ;;  %s677_s3 = inlined_call_operand.hbm [shape: f32[32,384], index: 3, kind: output, shape index: {}]  }
   0x1   :  { %9 = vsyncpa [#allocation7], 0 }
   0x2   :  { %10 = vsyncpa [#allocation5], 0  ;;  %s597_s12 = smov [#allocation3]   ;;  %s525_s16 = scalar_lea.hbm %s674_s0, 512 }
   0x3   :  { %s16_s13 = sshll.u32 %s597_s12, 4  ;;  %p526_p0 = scmp.ne.s32.totalorder %s674_s0, %s525_s16  ;;  %s17_s13 = int_to_ptr.vmem [resolvable:$true] %s16_s13 }
   0x4   :  { %p529_p1 = scmp.lt.u32.totalorder %s525_s16, %s674_s0 }
   0x6   :  { %p531_p2 = pnand %p529_p1, %p526_p0 }
   0x8   :  { %534 = shalt.err (!%p531_p2)
}
   0x9   :  { %s535_s21 = scalar_lea.vmem %s17_s13, 512  ;;  %p540_p4 = scmp.lt.s32.totalorder %s17_s13, %s17_s13 }
   0xa   :  { %p536_p3 = scmp.ne.s32.totalorder %s17_s13, %s535_s21  ;;  %p541_p5 = scmp.lt.s32.totalorder %s535_s21, %s535_s21 }
   0xc   :  { %p542_p6 = por %p541_p5, %p540_p4 }
   0xe   :  { %p543_p7 = pnand %p542_p6, %p536_p3 }
  0x10   :  { %546 = shalt.err (!%p543_p7)
}
  0x11   :  { %s598_s22 = smov 128   ;;  %s599_s23 = smov 8  }
  0x12   :  { %22 = dma.hbm_to_vmem [thread:$0]  %s674_s0, 512, %s17_s13, [#allocation4], %s598_s22, %s598_s22, %s599_s23  }
  0x13   :  { %s600_s26 = smov [#allocation6]   ;;  %s547_s30 = scalar_lea.hbm %s675_s1, 6144 }
  0x14   :  { %s28_s27 = sshll.u32 %s600_s26, 4  ;;  %p548_p8 = scmp.ne.s32.totalorder %s675_s1, %s547_s30  ;;  %s29_s27 = int_to_ptr.vmem [resolvable:$true] %s28_s27 }
  0x15   :  { %p551_p9 = scmp.lt.u32.totalorder %s547_s30, %s675_s1 }
  0x17   :  { %p553_p10 = pnand %p551_p9, %p548_p8 }
  0x19   :  { %556 = shalt.err (!%p553_p10)
}
  0x1a   :  { %s557_s8 = scalar_lea.vmem %s29_s27, 6144  ;;  %p562_p12 = scmp.lt.s32.totalorder %s29_s27, %s29_s27 }
  0x1b   :  { %p558_p11 = scmp.ne.s32.totalorder %s29_s27, %s557_s8  ;;  %p563_p13 = scmp.lt.s32.totalorder %s557_s8, %s557_s8 }
  0x1d   :  { %p564_p0 = por %p563_p13, %p562_p12 }
  0x1f   :  { %p565_p1 = pnand %p564_p0, %p558_p11 }
  0x21   :  { %568 = shalt.err (!%p565_p1)
}
  0x22   :  { %s601_s0 = smov 384   ;;  %s602_s9 = smov 24  }
  0x23   :  { %34 = dma.hbm_to_vmem [thread:$0]  %s675_s1, 6144, %s29_s27, [#allocation7], %s601_s0, %s601_s0, %s602_s9  }
  0x24   :  { %591 = dma.done.wait [#allocation4], 512  }
  0x25   :  { %592 = vsyncadd [#allocation4], 4294966784 }
  0x26   :  { %593 = dma.done.wait [#allocation7], 6144  }
  0x27   :  { %594 = vsyncadd [#allocation7], 4294961152  ;;  %v603_v0 = vmov 0.0   ;;  %v76_v1 = vld [vmem:[#allocation6 + $0x8] sm:$0xff]  ;;  %v79_v2 = vld [vmem:[#allocation6 + $0x20] sm:$0xff] }
  0x28   :  { %187 = vmatprep.mubr.f32.mxu0 %v603_v0  ;;  %v75_v3 = vld [vmem:[#allocation6] sm:$0xff]  ;;  %v453_v4 = vpack.c.bf16 %v79_v2, %v76_v1  ;;  %v78_v5 = vld [vmem:[#allocation6 + $0x18] sm:$0xff]  ;;  %v85_v7 = vld [vmem:[#allocation6 + $0x50] sm:$0xff] }
  0x29   :  { %v82_v6 = vld [vmem:[#allocation6 + $0x38] sm:$0xff]  ;;  %v455_v8 = vpack.c.bf16 %v78_v5, %v75_v3  ;;  %v81_v10 = vld [vmem:[#allocation6 + $0x30] sm:$0xff]  ;;  %v84_v11 = vld [vmem:[#allocation6 + $0x48] sm:$0xff] }
  0x2a   :  { %v457_v9 = vpack.c.bf16 %v85_v7, %v82_v6  ;;  %v77_v12 = vld [vmem:[#allocation6 + $0x10] sm:$0xff]  ;;  %454 = vmatprep.subr.bf16.mxu0 %v453_v4  ;;  %v80_v13 = vld [vmem:[#allocation6 + $0x28] sm:$0xff]  ;;  %v91_v15 = vld [vmem:[#allocation6 + $0x80] sm:$0xff]  ;;  %v459_v16 = vpack.c.bf16 %v84_v11, %v81_v10 }
  0x2b   :  { %v88_v14 = vld [vmem:[#allocation6 + $0x68] sm:$0xff]  ;;  %456 = vmatpush1.bf16.msra.mxu0 %v455_v8  ;;  %v485_v17 = vpack.c.bf16 %v80_v13, %v77_v12  ;;  %v83_v18 = vld [vmem:[#allocation6 + $0x40] sm:$0xff]  ;;  %v90_v21 = vld [vmem:[#allocation6 + $0x78] sm:$0xff] }
  0x2c   :  { %458 = vmatprep.subr.bf16.mxu0 %v457_v9  ;;  %v461_v19 = vpack.c.bf16 %v91_v15, %v88_v14  ;;  %v87_v20 = vld [vmem:[#allocation6 + $0x60] sm:$0xff]  ;;  %v86_v22 = vld [vmem:[#allocation6 + $0x58] sm:$0xff]  ;;  %v97_v25 = vld [vmem:[#allocation6 + $0xb0] sm:$0xff]  ;;  %v338_v14 = vlaneseq }
  0x2d   :  { %486 = vmatprep.subr.bf16.mxu1 %v485_v17  ;;  %v489_v23 = vpack.c.bf16 %v86_v22, %v83_v18  ;;  %v94_v24 = vld [vmem:[#allocation6 + $0x98] sm:$0xff]  ;;  %v89_v26 = vld [vmem:[#allocation6 + $0x70] sm:$0xff]  ;;  %v92_v27 = vld [vmem:[#allocation6 + $0x88] sm:$0xff]  ;;  %v463_v28 = vpack.c.bf16 %v90_v21, %v87_v20 }
  0x2e   :  { %488 = vmatpush3.bf16.msra.mxu1 %v485_v17  ;;  %v93_v29 = vld [vmem:[#allocation6 + $0x90] sm:$0xff]  ;;  %v493_v30 = vpack.c.bf16 %v92_v27, %v89_v26  ;;  %v465_v31 = vpack.c.bf16 %v97_v25, %v94_v24  ;;  %v96_v32 = vld [vmem:[#allocation6 + $0xa8] sm:$0xff]  ;;  %v95_v33 = vld [vmem:[#allocation6 + $0xa0] sm:$0xff]  ;;  %v339_v15 = vshrl.u32 %v338_v14, 7 }
  0x2f   :  { %460 = vmatpush1.bf16.msra.mxu0 %v459_v16  ;;  %490 = vmatprep.subr.bf16.mxu1 %v489_v23  ;;  %v98_v34 = vld [vmem:[#allocation6 + $0xb8] sm:$0xff]  ;;  %v100_v35 = vld [vmem:[#allocation6 + $0xc8] sm:$0xff]  ;;  %v103_v36 = vld [vmem:[#allocation6 + $0xe0] sm:$0xff]  ;;  %v467_v37 = vpack.c.bf16 %v96_v32, %v93_v29 }
  0x30   :  { %462 = vmatprep.subr.bf16.mxu0 %v461_v19  ;;  %v99_v38 = vld [vmem:[#allocation6 + $0xc0] sm:$0xff]  ;;  %v497_v39 = vpack.c.bf16 %v98_v34, %v95_v33  ;;  %v469_v40 = vpack.c.bf16 %v103_v36, %v100_v35  ;;  %v102_v41 = vld [vmem:[#allocation6 + $0xd8] sm:$0xff]  ;;  %v101_v42 = vld [vmem:[#allocation6 + $0xd0] sm:$0xff]  ;;  %v340_v16 = vsub.s32 0, %v339_v15  ;;  %v344_v18 = vsub.s32 1, %v339_v15 }
  0x31   :  { %v104_v43 = vld [vmem:[#allocation6 + $0xe8] sm:$0xff]  ;;  %v106_v44 = vld [vmem:[#allocation6 + $0xf8] sm:$0xff]  ;;  %v109_v45 = vld [vmem:[#allocation6 + $0x110] sm:$0xff]  ;;  %v471_v46 = vpack.c.bf16 %v102_v41, %v99_v38  ;;  %v348_v19 = vsub.s32 2, %v339_v15 }
  0x32   :  { %492 = vmatpush3.bf16.msra.mxu1 %v489_v23  ;;  %v105_v47 = vld [vmem:[#allocation6 + $0xf0] sm:$0xff]  ;;  %v501_v48 = vpack.c.bf16 %v104_v43, %v101_v42  ;;  %v71_v49 = vld [vmem:[#allocation3] sm:$0xff]  ;;  %v473_v50 = vpack.c.bf16 %v109_v45, %v106_v44  ;;  %v108_v51 = vld [vmem:[#allocation6 + $0x108] sm:$0xff] }
  0x33   :  { %464 = vmatpush1.bf16.msra.mxu0 %v463_v28  ;;  %494 = vmatprep.subr.bf16.mxu1 %v493_v30  ;;  %v107_v52 = vld [vmem:[#allocation6 + $0x100] sm:$0xff]  ;;  %v110_v53 = vld [vmem:[#allocation6 + $0x118] sm:$0xff]  ;;  %v112_v54 = vld [vmem:[#allocation6 + $0x128] sm:$0xff]  ;;  %v475_v56 = vpack.c.bf16 %v108_v51, %v105_v47 }
  0x34   :  { %466 = vmatprep.subr.bf16.mxu0 %v465_v31  ;;  %447 = vmatprep.mubr.f32.mxu1 %v71_v49  ;;  %v115_v55 = vld [vmem:[#allocation6 + $0x140] sm:$0xff]  ;;  %v505_v58 = vpack.c.bf16 %v110_v53, %v107_v52  ;;  %v114_v60 = vld [vmem:[#allocation6 + $0x138] sm:$0xff]  ;;  %v113_v61 = vld [vmem:[#allocation6 + $0x130] sm:$0xff] }
  0x35   :  { %v111_v57 = vld [vmem:[#allocation6 + $0x120] sm:$0xff]  ;;  %v477_v59 = vpack.c.bf16 %v115_v55, %v112_v54  ;;  %v116_v62 = vld [vmem:[#allocation6 + $0x148] sm:$0xff]  ;;  %v118_v63 = vld [vmem:[#allocation6 + $0x158] sm:$0xff] }
  0x36   :  { %496 = vmatpush3.bf16.msra.mxu1 %v493_v30  ;;  %v121_v1 = vld [vmem:[#allocation6 + $0x170] sm:$0xff]  ;;  %v479_v2 = vpack.c.bf16 %v114_v60, %v111_v57  ;;  %v509_v4 = vpack.c.bf16 %v116_v62, %v113_v61  ;;  %v120_v6 = vld [vmem:[#allocation6 + $0x168] sm:$0xff]  ;;  %v119_v7 = vld [vmem:[#allocation6 + $0x160] sm:$0xff] }
  0x37   :  { %468 = vmatpush1.bf16.msra.mxu0 %v467_v37  ;;  %498 = vmatprep.subr.bf16.mxu1 %v497_v39  ;;  %v117_v3 = vld [vmem:[#allocation6 + $0x150] sm:$0xff]  ;;  %v481_v5 = vpack.c.bf16 %v121_v1, %v118_v63  ;;  %v122_v8 = vld [vmem:[#allocation6 + $0x178] sm:$0xff]  ;;  %v72_v11 = vld [vmem:[#allocation3 + $0x8] sm:$0xff] }
  0x38   :  { %470 = vmatprep.subr.bf16.mxu0 %v469_v40  ;;  %v483_v9 = vpack.c.bf16 %v120_v6, %v117_v3  ;;  %v513_v10 = vpack.c.bf16 %v122_v8, %v119_v7  ;;  %v73_v12 = vld [vmem:[#allocation3 + $0x10] sm:$0xff]  ;;  %v74_v13 = vld [vmem:[#allocation3 + $0x18] sm:$0xff]  ;;  %v336_v17 = vld [vmem:[%s676_s2] sm:$0x7]  ;;  %s604_s2 = smov [#allocation8]  }
  0x39   :  { %v341_v20 = vrot.slane %v336_v17, %v340_v16  ;;  %v345_v21 = vrot.slane %v336_v17, %v344_v18  ;;  %v349_v23 = vrot.slane %v336_v17, %v348_v19  ;;  %s382_s13 = sshll.u32 %s604_s2, 4  ;;  %s383_s13 = int_to_ptr.vmem [resolvable:$true] %s382_s13 }
  0x3a   :  { %500 = vmatpush3.bf16.msra.mxu1 %v497_v39  ;;  %s569_s14 = scalar_lea.vmem %s383_s13, 1536  ;;  %p574_p3 = scmp.lt.s32.totalorder %s383_s13, %s383_s13 }
  0x3b   :  { %472 = vmatpush1.bf16.msra.mxu0 %v471_v46  ;;  %502 = vmatprep.subr.bf16.mxu1 %v501_v48  ;;  %p570_p2 = scmp.ne.s32.totalorder %s383_s13, %s569_s14  ;;  %p575_p4 = scmp.lt.s32.totalorder %s569_s14, %s569_s14 }
  0x3c   :  { %474 = vmatprep.subr.bf16.mxu0 %v473_v50 }
  0x3d   :  { %p576_p5 = por %p575_p4, %p574_p3 }
  0x3e   :  { %504 = vmatpush3.bf16.msra.mxu1 %v501_v48 }
  0x3f   :  { %476 = vmatpush1.bf16.msra.mxu0 %v475_v56  ;;  %506 = vmatprep.subr.bf16.mxu1 %v505_v58  ;;  %p577_p6 = pnand %p576_p5, %p570_p2 }
  0x40   :  { %478 = vmatprep.subr.bf16.mxu0 %v477_v59 }
  0x42   :  { %508 = vmatpush3.bf16.msra.mxu1 %v505_v58 }
  0x43   :  { %480 = vmatpush1.bf16.msra.mxu0 %v479_v2  ;;  %510 = vmatprep.subr.bf16.mxu1 %v509_v4 }
  0x44   :  { %482 = vmatprep.subr.bf16.mxu0 %v481_v5 }
  0x46   :  { %512 = vmatpush3.bf16.msra.mxu1 %v509_v4 }
  0x47   :  { %484 = vmatpush1.bf16.msra.mxu0 %v483_v9  ;;  %514 = vmatprep.subr.bf16.mxu1 %v513_v10 }
  0x4a   :  { %188 = vmatmul.mubr.f32.vlgmr.msra.gmra.mrb[0].mxu0 %v71_v49  ;;  %516 = vmatpush3.bf16.msra.mxu1 %v513_v10 }
  0x4b   :  { %193 = vmatprep.mubr.f32.mxu0 %v603_v0 }
  0x4d   :  { %448 = vmatmul.mubr.f32.vlgmr.msra.gmra.mrb[0].mxu1 %v72_v11 }
  0x4e   :  { %194 = vmatmul.mubr.f32.gmra.mrb[2].mxu0 %v72_v11  ;;  %450 = vmatprep.mubr.f32.mxu1 %v73_v12 }
  0x4f   :  { %199 = vmatprep.mubr.f32.mxu0 %v603_v0 }
  0x51   :  { %451 = vmatmul.mubr.f32.gmra.mrb[2].mxu1 %v74_v13 }
  0x52   :  { %200 = vmatmul.mubr.f32.gmra.mrb[4].mxu0 %v73_v12 }
  0x53   :  { %205 = vmatprep.mubr.f32.mxu0 %v603_v0 }
  0x56   :  { %206 = vmatmul.mubr.f32.gmra.mrb[6].mxu0 %v74_v13 }
 0x11d   :  { %v189_v22 = vpop.f32.mrb[0].mxu0 }
 0x11e   :  { %v353_v24 = vadd.f32 %v341_v20, %v189_v22  ;;  %v191_v25 = vpop.f32.mrb[1].mxu0 }
 0x11f   :  { %v354_v26 = vadd.f32 %v345_v21, %v191_v25 }
 0x120   :  { %365 = vst [vmem:[#allocation8] sm:$0xff] %v353_v24  ;;  %v449_v27 = vpop.f32.mrb[0].mxu1 }
 0x121   :  { %366 = vst [vmem:[#allocation8 + $0x8] sm:$0xff] %v354_v26  ;;  %v195_v0 = vpop.f32.mrb[2].mxu0  ;;  %v358_v28 = vadd.f32 %v449_v27, %v349_v23  ;;  %v278_v29 = vpop.f32.mrb[1].mxu1 }
 0x122   :  { %v356_v30 = vadd.f32 %v341_v20, %v195_v0  ;;  %v197_v31 = vpop.f32.mrb[3].mxu0  ;;  %v355_v32 = vadd.f32 %v349_v23, %v278_v29 }
 0x123   :  { %v357_v33 = vadd.f32 %v345_v21, %v197_v31  ;;  %370 = vst [vmem:[#allocation8 + $0x28] sm:$0xff] %v358_v28 }
 0x124   :  { %368 = vst [vmem:[#allocation8 + $0x18] sm:$0xff] %v356_v30  ;;  %367 = vst [vmem:[#allocation8 + $0x10] sm:$0xff] %v355_v32  ;;  %v452_v34 = vpop.f32.mrb[2].mxu1 }
 0x125   :  { %369 = vst [vmem:[#allocation8 + $0x20] sm:$0xff] %v357_v33  ;;  %v201_v35 = vpop.f32.mrb[4].mxu0  ;;  %v364_v36 = vadd.f32 %v452_v34, %v349_v23  ;;  %v288_v37 = vpop.f32.mrb[3].mxu1 }
 0x126   :  { %v359_v38 = vadd.f32 %v341_v20, %v201_v35  ;;  %v203_v39 = vpop.f32.mrb[5].mxu0  ;;  %v361_v40 = vadd.f32 %v349_v23, %v288_v37 }
 0x127   :  { %v360_v41 = vadd.f32 %v345_v21, %v203_v39  ;;  %376 = vst [vmem:[#allocation8 + $0x58] sm:$0xff] %v364_v36 }
 0x128   :  { %371 = vst [vmem:[#allocation8 + $0x30] sm:$0xff] %v359_v38  ;;  %373 = vst [vmem:[#allocation8 + $0x40] sm:$0xff] %v361_v40 }
 0x129   :  { %372 = vst [vmem:[#allocation8 + $0x38] sm:$0xff] %v360_v41  ;;  %v207_v42 = vpop.f32.mrb[6].mxu0 }
 0x12a   :  { %v362_v43 = vadd.f32 %v341_v20, %v207_v42  ;;  %v209_v44 = vpop.f32.mrb[7].mxu0 }
 0x12b   :  { %v363_v45 = vadd.f32 %v345_v21, %v209_v44 }
 0x12c   :  { %374 = vst [vmem:[#allocation8 + $0x48] sm:$0xff] %v362_v43 }
 0x12d   :  { %375 = vst [vmem:[#allocation8 + $0x50] sm:$0xff] %v363_v45 }
 0x12e   :  { %580 = shalt.err (!%p577_p6)
}
 0x12f   :  { %s581_s17 = scalar_lea.hbm %s677_s3, 1536 }
 0x130   :  { %p582_p7 = scmp.ne.s32.totalorder %s677_s3, %s581_s17  ;;  %p585_p8 = scmp.lt.u32.totalorder %s581_s17, %s677_s3 }
 0x132   :  { %p587_p9 = pnand %p585_p8, %p582_p7 }
 0x134   :  { %590 = shalt.err (!%p587_p9)
}
 0x135   :  { %388 = dma.vmem_to_hbm [thread:$0]  %s383_s13, 1536, %s677_s3, [#allocation5], %s601_s0, %s601_s0, %s602_s9  }
 0x136   :  { %595 = dma.done.wait [#allocation5], 1536  }
 0x137   :  { %596 = vsyncadd [#allocation5], 4294965760 }
 0x138   :  { %392 = vsyncpa [#allocation4], 1 }
 0x139   :  { %393 = vsyncpa [#allocation7], 1 }
 0x13a   :  { %394 = vsyncpa [#allocation5], 1 }

</bundles_post_ra>
